<compile_context>
chip_gen: v6e
topology: v6e:2x2x1
jax: 0.10.0
libtpu: 0.0.40
codegen_flags: <defaults>
</compile_context>

<pallas_src>
import functools

import jax
import jax.numpy as jnp
from jax.experimental import pallas as pl
from jax.experimental.pallas import tpu as pltpu


def _get_alpha_kernel(x_ref, w1t_ref, w2_ref, o_ref,
                      sum_acc, max_acc, p_scratch, *, inv_hw, tn):
    """x_ref:    (TN, 2C, THW) input tile (native dtype)
       w1t_ref:  (2C, C)  fc1 1x1-conv weight, pre-transposed
       w2_ref:   (1, C)   fc2 1x1-conv weight
       o_ref:    (TN, 1)  output block (written only on the last spatial step)
       sum_acc/max_acc: (TN, 2C, THW) f32 pooling accumulators (VMEM scratch)
       p_scratch:       (2*TN, 2C)    f32 staging so fc1 is a single matmul
    """
    j = pl.program_id(1)

    @pl.when(j == 0)
    def _init():
        sum_acc[...] = jnp.zeros_like(sum_acc)
        max_acc[...] = jnp.full_like(max_acc, -jnp.inf)

    # Pure VPU accumulation (elementwise add / max co-issue with the streaming
    # vector loads); the cross-lane reduce is deferred to the epilogue so the
    # steady state stays DMA-bound on all generations.
    x = x_ref[...].astype(jnp.float32)
    sum_acc[...] = sum_acc[...] + x
    max_acc[...] = jnp.maximum(max_acc[...], x)

    @pl.when(j == pl.num_programs(1) - 1)
    def _finalize():
        avg = jnp.sum(sum_acc[...], axis=-1) * inv_hw      # (TN, 2C)  one XLU reduce
        mx = jnp.max(max_acc[...], axis=-1)                # (TN, 2C)  one XLU reduce
        # Merge both pooled inputs into one LHS so fc1 is a single MXU matmul.
        p_scratch[0:tn, :] = avg
        p_scratch[tn:2 * tn, :] = mx
        h = jnp.dot(p_scratch[...], w1t_ref[...],
                    preferred_element_type=jnp.float32)    # (2*TN, C) == fc1
        h = jnp.maximum(h, 0.0)                            # ReLU
        # fc2 (C -> 1): broadcast-mul + reduce instead of a 1-lane-output matmul.
        s = jnp.sum(h * w2_ref[...], axis=-1, keepdims=True)   # (2*TN, 1)
        out = s[0:tn, :] + s[tn:2 * tn, :]                 # avg head + max head
        o_ref[...] = jax.nn.sigmoid(out).astype(o_ref.dtype)


def _pick_thw(hw, max_lanes=2048):
    """Largest multiple of 128 that divides hw and is <= max_lanes; else full hw
    (a block equal to the full dim is always legal)."""
    if hw % 128 != 0 or hw <= max_lanes:
        return hw
    best = 128
    for d in range(128, max_lanes + 1, 128):
        if hw % d == 0:
            best = d
    return best


def _pick_tn(n, c2, thw, itemsize, target_bytes=2 << 20):
    """Batch tile; (tn, 1) must be a legal output block -> tn == n or tn % 8 == 0."""
    per_row = c2 * thw * itemsize
    want = max(1, target_bytes // max(per_row, 1))
    if want >= n:
        return n
    best = None
    d = 8
    while d <= min(want, n):
        if n % d == 0:
            best = d
        d += 8
    return best if best is not None else n


def get_alpha(x, w1, w2, *, thw=None, tn=None):
    """x: (N, 2*C, H, W) NCHW, any float dtype.  w1: (C, 2C) fc1 weight,
    w2: (1, C) fc2 weight.  Returns (N, 1, 1, 1) float32, matching getAlpha.forward."""
    N, C2, H, W = x.shape
    C = w1.shape[0]
    assert w1.shape == (C, C2) and w2.shape == (1, C)
    HW = H * W

    x_flat = x.reshape(N, C2, HW)              # contiguous reshape, keep native dtype
    w1t = jnp.asarray(w1, jnp.float32).T       # (2C, C)
    w2r = jnp.asarray(w2, jnp.float32)         # (1, C)

    if thw is None:
        thw = _pick_thw(HW)
    if tn is None:
        tn = _pick_tn(N, C2, thw, x.dtype.itemsize)
    assert HW % thw == 0 and N % tn == 0
    assert tn == N or tn % 8 == 0

    grid = (N // tn, HW // thw)                # spatial reduction axis innermost

    kernel = functools.partial(_get_alpha_kernel, inv_hw=1.0 / HW, tn=tn)

    out = pl.pallas_call(
        kernel,
        out_shape=jax.ShapeDtypeStruct((N, 1), jnp.float32),
        grid=grid,
        in_specs=[
            pl.BlockSpec((tn, C2, thw), lambda i, j: (i, 0, j)),
            pl.BlockSpec((C2, C), lambda i, j: (0, 0)),
            pl.BlockSpec((1, C), lambda i, j: (0, 0)),
        ],
        out_specs=pl.BlockSpec((tn, 1), lambda i, j: (i, 0)),
        scratch_shapes=[
            pltpu.VMEM((tn, C2, thw), jnp.float32),   # sum accumulator
            pltpu.VMEM((tn, C2, thw), jnp.float32),   # max accumulator
            pltpu.VMEM((2 * tn, C2), jnp.float32),    # merged fc1 LHS staging
        ],
        compiler_params=pltpu.CompilerParams(
            dimension_semantics=("parallel", "arbitrary"),
            vmem_limit_bytes=32 * 1024 * 1024,
        ),
    )(x_flat, w1t, w2r)

    return out.reshape(N, 1, 1, 1)


def reference(x, w1, w2):
    # Pure-JAX reference of the PyTorch forward, for sanity checking.
    xf = x.astype(jnp.float32)
    avg = jnp.mean(xf, axis=(2, 3))             # (N, 2C)
    mx = jnp.max(xf, axis=(2, 3))               # (N, 2C)

    def head(p):
        h = jnp.maximum(p @ w1.T, 0.0)          # (N, C)
        return h @ w2.T                         # (N, 1)

    out = head(avg) + head(mx)
    return jax.nn.sigmoid(out).reshape(-1, 1, 1, 1)


if __name__ == "__main__":
    in_channels = 4          # module's `in_channels`; input x has 2*in_channels channels
    N, H, W = 2, 16, 16

    key = jax.random.PRNGKey(0)
    kx, k1, k2 = jax.random.split(key, 3)

    x = jax.random.normal(kx, (N, 2 * in_channels, H, W), dtype=jnp.float32)
    w1 = jax.random.normal(k1, (in_channels, 2 * in_channels), dtype=jnp.float32) * 0.1
    w2 = jax.random.normal(k2, (1, in_channels), dtype=jnp.float32) * 0.1

    ref = reference(x, w1, w2)

    # Default (auto) tiling.
    out = jax.block_until_ready(get_alpha(x, w1, w2))
    assert out.shape == (N, 1, 1, 1)
    assert jnp.allclose(out, ref, atol=1e-5, rtol=1e-5), (out, ref)

    # Force multiple spatial grid steps to exercise the pipelined
    # accumulate + pl.when init/epilogue path.
    out_tiled = jax.block_until_ready(get_alpha(x, w1, w2, thw=128))
    assert jnp.allclose(out_tiled, ref, atol=1e-5, rtol=1e-5), (out_tiled, ref)

    print("KERNEL_OK")
</pallas_src>

<mosaic_0001>
module attributes {stable_mosaic.version = 11 : i64} {
  func.func @_get_alpha_kernel(%arg0: i32, %arg1: i32, %arg2: memref<2x8x256xf32, #tpu.memory_space<vmem>>, %arg3: memref<8x4xf32, #tpu.memory_space<vmem>>, %arg4: memref<1x4xf32, #tpu.memory_space<vmem>>, %arg5: memref<2x1xf32, #tpu.memory_space<vmem>>, %arg6: memref<2x8x256xf32, #tpu.memory_space<vmem>>, %arg7: memref<2x8x256xf32, #tpu.memory_space<vmem>>, %arg8: memref<4x8xf32, #tpu.memory_space<vmem>>) attributes {dimension_semantics = [#tpu.dimension_semantics<parallel>, #tpu.dimension_semantics<arbitrary>], iteration_bounds = array<i64: 1, 1>, scalar_prefetch = 0 : i64, scratch_operands = 3 : i64, tpu.core_type = #tpu.core_type<tc>, window_params = [{transform_indices = @transform_0, window_bounds = array<i64: 2, 8, 256>}, {pipeline_mode = #tpu.pipeline_mode<synchronous>, transform_indices = @transform_1, window_bounds = array<i64: 8, 4>}, {pipeline_mode = #tpu.pipeline_mode<synchronous>, transform_indices = @transform_2, window_bounds = array<i64: 1, 4>}, {transform_indices = @transform_3, window_bounds = array<i64: 2, 1>}]} {
    %c0_i32 = arith.constant 0 : i32
    %0 = arith.cmpi eq, %arg1, %c0_i32 : i32
    %1 = arith.extui %0 : i1 to i32
    %c0_i32_0 = arith.constant 0 : i32
    %2 = arith.cmpi ne, %1, %c0_i32_0 : i32
    scf.if %2 {
      %cst = arith.constant 0.000000e+00 : f32
      %13 = vector.broadcast %cst : f32 to vector<2x8x256xf32>
      %c0_17 = arith.constant 0 : index
      %c0_18 = arith.constant 0 : index
      %c0_19 = arith.constant 0 : index
      %14 = vector.load %arg6[%c0_17, %c0_18, %c0_19] : memref<2x8x256xf32, #tpu.memory_space<vmem>>, vector<2x8x256xf32>
      tpu.vector_store %arg6[%c0_17, %c0_18, %c0_19], %13 {strides = array<i32>} : memref<2x8x256xf32, #tpu.memory_space<vmem>>, vector<2x8x256xf32>,
      %cst_20 = arith.constant 0xFF800000 : f32
      %15 = vector.broadcast %cst_20 : f32 to vector<2x8x256xf32>
      %c0_21 = arith.constant 0 : index
      %c0_22 = arith.constant 0 : index
      %c0_23 = arith.constant 0 : index
      %16 = vector.load %arg7[%c0_21, %c0_22, %c0_23] : memref<2x8x256xf32, #tpu.memory_space<vmem>>, vector<2x8x256xf32>
      tpu.vector_store %arg7[%c0_21, %c0_22, %c0_23], %15 {strides = array<i32>} : memref<2x8x256xf32, #tpu.memory_space<vmem>>, vector<2x8x256xf32>,
    } else {
    }
    %c0 = arith.constant 0 : index
    %c0_1 = arith.constant 0 : index
    %c0_2 = arith.constant 0 : index
    %3 = vector.load %arg2[%c0, %c0_1, %c0_2] : memref<2x8x256xf32, #tpu.memory_space<vmem>>, vector<2x8x256xf32>
    %c0_3 = arith.constant 0 : index
    %c0_4 = arith.constant 0 : index
    %c0_5 = arith.constant 0 : index
    %4 = vector.load %arg6[%c0_3, %c0_4, %c0_5] : memref<2x8x256xf32, #tpu.memory_space<vmem>>, vector<2x8x256xf32>
    %5 = arith.addf %4, %3 : vector<2x8x256xf32>
    %c0_6 = arith.constant 0 : index
    %c0_7 = arith.constant 0 : index
    %c0_8 = arith.constant 0 : index
    %6 = vector.load %arg6[%c0_6, %c0_7, %c0_8] : memref<2x8x256xf32, #tpu.memory_space<vmem>>, vector<2x8x256xf32>
    tpu.vector_store %arg6[%c0_6, %c0_7, %c0_8], %5 {strides = array<i32>} : memref<2x8x256xf32, #tpu.memory_space<vmem>>, vector<2x8x256xf32>,
    %c0_9 = arith.constant 0 : index
    %c0_10 = arith.constant 0 : index
    %c0_11 = arith.constant 0 : index
    %7 = vector.load %arg7[%c0_9, %c0_10, %c0_11] : memref<2x8x256xf32, #tpu.memory_space<vmem>>, vector<2x8x256xf32>
    %8 = arith.maximumf %7, %3 : vector<2x8x256xf32>
    %c0_12 = arith.constant 0 : index
    %c0_13 = arith.constant 0 : index
    %c0_14 = arith.constant 0 : index
    %9 = vector.load %arg7[%c0_12, %c0_13, %c0_14] : memref<2x8x256xf32, #tpu.memory_space<vmem>>, vector<2x8x256xf32>
    tpu.vector_store %arg7[%c0_12, %c0_13, %c0_14], %8 {strides = array<i32>} : memref<2x8x256xf32, #tpu.memory_space<vmem>>, vector<2x8x256xf32>,
    %c0_i32_15 = arith.constant 0 : i32
    %10 = arith.cmpi eq, %arg1, %c0_i32_15 : i32
    %11 = arith.extui %10 : i1 to i32
    %c0_i32_16 = arith.constant 0 : i32
    %12 = arith.cmpi ne, %11, %c0_i32_16 : i32
    scf.if %12 {
      %c0_17 = arith.constant 0 : index
      %c0_18 = arith.constant 0 : index
      %c0_19 = arith.constant 0 : index
      %13 = vector.load %arg6[%c0_17, %c0_18, %c0_19] : memref<2x8x256xf32, #tpu.memory_space<vmem>>, vector<2x8x256xf32>
      %cst = arith.constant dense<0.000000e+00> : vector<2x8xf32>
      %14 = vector.multi_reduction <add>, %13, %cst [2] : vector<2x8x256xf32> to vector<2x8xf32>
      %cst_20 = arith.constant 3.906250e-03 : f32
      %15 = vector.broadcast %cst_20 : f32 to vector<2x8xf32>
      %16 = arith.mulf %14, %15 : vector<2x8xf32>
      %c0_21 = arith.constant 0 : index
      %c0_22 = arith.constant 0 : index
      %c0_23 = arith.constant 0 : index
      %17 = vector.load %arg7[%c0_21, %c0_22, %c0_23] : memref<2x8x256xf32, #tpu.memory_space<vmem>>, vector<2x8x256xf32>
      %cst_24 = arith.constant dense<0xFF800000> : vector<2x8xf32>
      %18 = vector.multi_reduction <maximumf>, %17, %cst_24 [2] : vector<2x8x256xf32> to vector<2x8xf32>
      %c0_25 = arith.constant 0 : index
      %c0_26 = arith.constant 0 : index
      %19 = vector.load %arg8[%c0_25, %c0_26] : memref<4x8xf32, #tpu.memory_space<vmem>>, vector<2x8xf32>
      tpu.vector_store %arg8[%c0_25, %c0_26], %16 {strides = array<i32>} : memref<4x8xf32, #tpu.memory_space<vmem>>, vector<2x8xf32>,
      %c2 = arith.constant 2 : index
      %c0_27 = arith.constant 0 : index
      %20 = vector.load %arg8[%c2, %c0_27] : memref<4x8xf32, #tpu.memory_space<vmem>>, vector<2x8xf32>
      tpu.vector_store %arg8[%c2, %c0_27], %18 {strides = array<i32>} : memref<4x8xf32, #tpu.memory_space<vmem>>, vector<2x8xf32>,
      %c0_28 = arith.constant 0 : index
      %c0_29 = arith.constant 0 : index
      %21 = vector.load %arg8[%c0_28, %c0_29] : memref<4x8xf32, #tpu.memory_space<vmem>>, vector<4x8xf32>
      %c0_30 = arith.constant 0 : index
      %c0_31 = arith.constant 0 : index
      %22 = vector.load %arg3[%c0_30, %c0_31] : memref<8x4xf32, #tpu.memory_space<vmem>>, vector<8x4xf32>
      %cst_32 = arith.constant dense<0.000000e+00> : vector<4x4xf32>
      %23 = tpu.matmul %21, %22, %cst_32 {dimension_numbers = #tpu.dot_dimension_numbers<[1], [0], [0], [1], [0, 0, 1, 1], [], []>} : vector<4x8xf32>, vector<8x4xf32>, vector<4x4xf32> -> vector<4x4xf32>
      %cst_33 = arith.constant 0.000000e+00 : f32
      %24 = vector.broadcast %cst_33 : f32 to vector<4x4xf32>
      %25 = arith.maximumf %23, %24 : vector<4x4xf32>
      %c0_34 = arith.constant 0 : index
      %c0_35 = arith.constant 0 : index
      %26 = vector.load %arg4[%c0_34, %c0_35] : memref<1x4xf32, #tpu.memory_space<vmem>>, vector<1x4xf32>
      %27 = vector.broadcast %26 : vector<1x4xf32> to vector<4x4xf32>
      %28 = arith.mulf %25, %27 : vector<4x4xf32>
      %cst_36 = arith.constant dense<0.000000e+00> : vector<4xf32>
      %29 = vector.multi_reduction <add>, %28, %cst_36 [1] : vector<4x4xf32> to vector<4xf32>
      %30 = vector.shape_cast %29 : vector<4xf32> to vector<4x1xf32>
      %31 = vector.extract_strided_slice %30 {offsets = [0, 0], sizes = [2, 1], strides = [1, 1]} : vector<4x1xf32> to vector<2x1xf32>
      %32 = vector.extract_strided_slice %30 {offsets = [2, 0], sizes = [2, 1], strides = [1, 1]} : vector<4x1xf32> to vector<2x1xf32>
      %33 = arith.addf %31, %32 : vector<2x1xf32>
      %34 = arith.negf %33 : vector<2x1xf32>
      %35 = math.exp %34 : vector<2x1xf32>
      %cst_37 = arith.constant 1.000000e+00 : f32
      %36 = vector.broadcast %cst_37 : f32 to vector<2x1xf32>
      %37 = arith.addf %36, %35 : vector<2x1xf32>
      %38 = arith.divf %36, %37 : vector<2x1xf32>
      %c0_38 = arith.constant 0 : index
      %c0_39 = arith.constant 0 : index
      %39 = vector.load %arg5[%c0_38, %c0_39] : memref<2x1xf32, #tpu.memory_space<vmem>>, vector<2x1xf32>
      tpu.vector_store %arg5[%c0_38, %c0_39], %38 {strides = array<i32>} : memref<2x1xf32, #tpu.memory_space<vmem>>, vector<2x1xf32>,
    } else {
    }
    return
  }
  func.func @transform_0(%arg0: i32, %arg1: i32) -> (i32, i32, i32) {
    %c0_i32 = arith.constant 0 : i32
    %c0_i32_0 = arith.constant 0 : i32
    return %arg0, %c0_i32, %arg1 : i32, i32, i32
  }
  func.func @transform_1(%arg0: i32, %arg1: i32) -> (i32, i32) {
    %c0_i32 = arith.constant 0 : i32
    %c0_i32_0 = arith.constant 0 : i32
    %c0_i32_1 = arith.constant 0 : i32
    return %c0_i32, %c0_i32_0 : i32, i32
  }
  func.func @transform_2(%arg0: i32, %arg1: i32) -> (i32, i32) {
    %c0_i32 = arith.constant 0 : i32
    %c0_i32_0 = arith.constant 0 : i32
    %c0_i32_1 = arith.constant 0 : i32
    return %c0_i32, %c0_i32_0 : i32, i32
  }
  func.func @transform_3(%arg0: i32, %arg1: i32) -> (i32, i32) {
    %c0_i32 = arith.constant 0 : i32
    %c0_i32_0 = arith.constant 0 : i32
    return %arg0, %c0_i32 : i32, i32
  }
}

</mosaic_0001>

<bundles_post_ra>
// kernel: tpu_custom_call.1
= control target key start
LH: loop header
LB: loop body
LE: loop exit
PB: predicated region body
PF: predicated region fallthrough
CT: control target
= control target key end

     0   :  { %8 = vsyncpa [#allocation6], 0  ;;  %s270_s12 = smov [#allocation5]   ;;  %s307_s0 = inlined_call_operand.hbm [shape: f32[2,8,256], index: 0, kind: input, shape index: {}]   ;;  %s308_s1 = inlined_call_operand.vmem [shape: f32[8,4], index: 1, kind: input, shape index: {}]   ;;  %s309_s2 = inlined_call_operand.vmem [shape: f32[1,4], index: 2, kind: input, shape index: {}]   ;;  %s310_s3 = inlined_call_operand.vmem [shape: f32[2,1], index: 3, kind: output, shape index: {}]  }
   0x1   :  { %s14_s13 = sshll.u32 %s270_s12, 4  ;;  %s15_s13 = int_to_ptr.vmem [resolvable:$true] %s14_s13 }
   0x2   :  { %s256_s14 = scalar_lea.vmem %s15_s13, 512  ;;  %p261_p1 = scmp.lt.s32.totalorder %s15_s13, %s15_s13 }
   0x3   :  { %p257_p0 = scmp.ne.s32.totalorder %s15_s13, %s256_s14  ;;  %p262_p2 = scmp.lt.s32.totalorder %s256_s14, %s256_s14 }
   0x5   :  { %p263_p3 = por %p262_p2, %p261_p1 }
   0x7   :  { %p264_p4 = pnand %p263_p3, %p257_p0 }
   0x9   :  { %267 = shalt.err (!%p264_p4)
}
   0xa   :  { %s271_s15 = smov 256   ;;  %s272_s16 = smov 16  }
   0xb   :  { %20 = dma.hbm_to_vmem [thread:$0]  %s307_s0, 512, %s15_s13, [#allocation6], %s271_s15, %s271_s15, %s272_s16  }
   0xc   :  { %268 = dma.done.wait [#allocation6], 512  }
   0xd   :  { %269 = vsyncadd [#allocation6], 4294966784  ;;  %v40_v0 = vld [vmem:[#allocation5] sm:$0xff]  ;;  %v41_v1 = vld [vmem:[#allocation5 + $0x8] sm:$0xff]  ;;  %v273_v9 = vmov 0.0   ;;  %vm274_vm0 = vmmov 0   ;;  %v95_v10 = vlaneseq }
   0xe   :  { %v42_v2 = vld [vmem:[#allocation5 + $0x10] sm:$0xff]  ;;  %v87_v3 = vmax.f32 %v40_v0, %v41_v1  ;;  %v75_v4 = vadd.f32 %v41_v1, %v40_v0  ;;  %v43_v5 = vld [vmem:[#allocation5 + $0x18] sm:$0xff]  ;;  %234 = vmatprep.subr.mxu0 %v273_v9  ;;  %236 = vmatprep.mubr.msk.f32.mxu0 %vm274_vm0, %v273_v9  ;;  %vm105_vm1 = vcmask 1041409   ;;  %vm108_vm2 = vcmask 58368  }
   0xf   :  { %v90_v6 = vmax.f32 %v42_v2, %v43_v5  ;;  %v78_v7 = vadd.f32 %v43_v5, %v42_v2  ;;  %v124_v8 = vld [vmem:[%s308_s1] sm:$0xff]  ;;  %v96_v11 = vand.u32 127, %v95_v10  ;;  %v98_v12 = vshrl.u32 %v95_v10, 7 }
  0x10   :  { %88 = vmax.xlane.f32.xlu1 %v87_v3  ;;  %76 = vadd.xlane.f32.xlu0 %v75_v4  ;;  %vm125_vm3 = vcmask 64512   ;;  %v230_v28 = vld [vmem:[%s309_s2] ss:$0 sm:$0xff]  ;;  %vm208_vm4 = vcmask 27648   ;;  %vm222_vm5 = vcmask 1024  }
  0x11   :  { %235 = vmatpush3.msra.mxu0 %v124_v8  ;;  %v99_v15 = vsub.s32 %v96_v11, %v98_v12 }
  0x14   :  { %91 = vmax.xlane.f32.xlu1 %v90_v6  ;;  %79 = vadd.xlane.f32.xlu0 %v78_v7 }
  0x99   :  { %v89_v13 = vpop.xlane.xlu1 %88  ;;  %v77_v14 = vpop.xlane.xlu0 %76 }
  0x9a   :  { %v81_v16 = vmul.f32 0.00390625, %v77_v14  ;;  %v115_v19 = vrot.slane %v89_v13, %v99_v15 }
  0x9c   :  { %v100_v22 = vrot.slane %v81_v16, %v99_v15 }
  0x9d   :  { %v92_v17 = vpop.xlane.xlu1 %91  ;;  %v80_v18 = vpop.xlane.xlu0 %79 }
  0x9e   :  { %v119_v20 = vrot.slane %v92_v17, %v99_v15  ;;  %v82_v21 = vmul.f32 0.00390625, %v80_v18 }
  0xa0   :  { %v120_v23 = vsel %vm105_vm1, %v119_v20, %v115_v19  ;;  %v104_v24 = vrot.slane %v82_v21, %v99_v15 }
  0xa1   :  { %122 = vst.msk [vmem:[#allocation4 + $0x2] sm:$0x3] %vm108_vm2, %v120_v23 }
  0xa2   :  { %v106_v25 = vsel %vm105_vm1, %v104_v24, %v100_v22 }
  0xa3   :  { %109 = vst.msk [vmem:[#allocation4] sm:$0x3] %vm108_vm2, %v106_v25 }
  0xaa   :  { %v123_v26 = vld [vmem:[#allocation4] sm:$0xf] }
  0xab   :  { %237 = vmatmul.mubr.msk.f32.vlgmr.msra.gmra.mxu0 %vm125_vm3, %v123_v26 }
 0x16b   :  { %v195_v27 = vpop.f32.mrf.mxu0 }
 0x16c   :  { %v199_v29 = vmax.f32 %v195_v27, 0.0 }
 0x16d   :  { %v238_v30 = vpop.f32.mrf.mxu0 }
 0x16e   :  { %v207_v31 = vmul.f32 %v230_v28, %v199_v29 }
 0x170   :  { %v209_v32 = vsel %vm208_vm4, %v207_v31, 0.0 }
 0x171   :  { %210 = vadd.xlane.f32.xlu0 %v209_v32 }
 0x1fa   :  { %v211_v33 = vpop.xlane.xlu0 %210 }
 0x1fb   :  { %v213_v34 = vrot.slane %v211_v33, 2 }
 0x1fd   :  { %v215_v35 = vadd.f32 %v213_v34, %v211_v33 }
 0x1ff   :  { %v231_v36 = vmul.f32 -1.442695, %v215_v35 }
 0x201   :  { %244 = vpow2.f32 %v231_v36 }
 0x20e   :  { %v245_v37 = vpop.eup %244 }
 0x20f   :  { %v219_v38 = vadd.f32 1.0, %v245_v37 }
 0x211   :  { %246 = vrcp.f32 %v219_v38 }
 0x21e   :  { %v247_v39 = vpop.eup %246 }
 0x21f   :  { %223 = vst.msk [vmem:[%s310_s3] sm:$0x3] %vm222_vm5, %v247_v39 }
 0x220   :  { %228 = vsyncpa [#allocation6], 1 }

</bundles_post_ra>
